<compile_context>
chip_gen: v6e
topology: v6e:2x2x1
jax: 0.10.0
libtpu: 0.0.40
codegen_flags: <defaults>
</compile_context>

<pallas_src>
import functools

import jax
import jax.numpy as jnp
from jax.experimental import pallas as pl
from jax.experimental.pallas import tpu as pltpu


def _nce_mae_kernel(pred_ref, labels_ref, nce_out_ref, mae_out_ref, *, n_total):
    pid = pl.program_id(0)

    pred = pred_ref[...].astype(jnp.float32)      # (TILE_N, C)
    labels = labels_ref[...]                      # (TILE_N, 1) int32
    tn, c = pred.shape

    # Validity mask for padded rows (last tile).
    row_ids = pid * tn + jax.lax.broadcasted_iota(jnp.int32, (tn, 1), 0)
    valid = row_ids < n_total                     # (TILE_N, 1) bool
    pred = jnp.where(valid, pred, 0.0)            # keep padded rows finite

    # log-softmax over the class axis (single exp per element, one log per row).
    m = jnp.max(pred, axis=1, keepdims=True)
    shifted = pred - m
    sum_exp = jnp.sum(jnp.exp(shifted), axis=1, keepdims=True)
    log_p = shifted - jnp.log(sum_exp)            # (TILE_N, C)

    # one_hot(labels, C) via iota compare.
    class_ids = jax.lax.broadcasted_iota(jnp.int32, (tn, c), 1)
    one_hot = (class_ids == labels).astype(jnp.float32)

    log_p_y = jnp.sum(one_hot * log_p, axis=1, keepdims=True)   # (TILE_N, 1)
    sum_log_p = jnp.sum(log_p, axis=1, keepdims=True)           # (TILE_N, 1)

    # NCE per row: (-log p_y) / (-sum_j log p_j)
    nce = log_p_y / sum_log_p
    # MAE per row: 1 - p_y   (p_y = exp(log_softmax_y) == softmax_y)
    mae = 1.0 - jnp.exp(log_p_y)

    validf = valid.astype(jnp.float32)
    nce_sum = jnp.sum(nce * validf)
    mae_sum = jnp.sum(mae * validf)

    # Lane-dense per-tile partials (reduced in the wrapper).
    nce_out_ref[...] = jnp.full(nce_out_ref.shape, nce_sum, dtype=jnp.float32)
    mae_out_ref[...] = jnp.full(mae_out_ref.shape, mae_sum, dtype=jnp.float32)


def nce_and_mae(pred, labels, *, alpha=1.0, beta=1.0, tile_n=512):
    n, c = pred.shape

    # Row-tile size: multiple of 8 (f32 sublanes), capped at tile_n so the pred
    # tile stays in the ~1-4 MiB sweet spot for typical class counts.
    tn = min(int(tile_n), ((n + 7) // 8) * 8)
    tn = max(8, ((tn + 7) // 8) * 8)
    num_tiles = pl.cdiv(n, tn)
    n_pad = num_tiles * tn

    labels_2d = labels.astype(jnp.int32).reshape(n, 1)
    if n_pad != n:
        pred = jnp.pad(pred, ((0, n_pad - n), (0, 0)))
        labels_2d = jnp.pad(labels_2d, ((0, n_pad - n), (0, 0)))

    kernel = functools.partial(_nce_mae_kernel, n_total=n)

    nce_part, mae_part = pl.pallas_call(
        kernel,
        grid=(num_tiles,),
        in_specs=[
            pl.BlockSpec((tn, c), lambda i: (i, 0)),   # pred tile
            pl.BlockSpec((tn, 1), lambda i: (i, 0)),   # labels tile
        ],
        out_specs=[
            pl.BlockSpec((1, 8, 128), lambda i: (i, 0, 0)),
            pl.BlockSpec((1, 8, 128), lambda i: (i, 0, 0)),
        ],
        out_shape=[
            jax.ShapeDtypeStruct((num_tiles, 8, 128), jnp.float32),
            jax.ShapeDtypeStruct((num_tiles, 8, 128), jnp.float32),
        ],
        compiler_params=pltpu.CompilerParams(
            dimension_semantics=("parallel",)),
    )(pred, labels_2d)

    nce_mean = jnp.sum(nce_part[:, 0, 0]) / n
    mae_mean = jnp.sum(mae_part[:, 0, 0]) / n
    return alpha * nce_mean + beta * mae_mean


def _reference(pred, labels, *, alpha, beta, num_classes):
    predf = pred.astype(jnp.float32)
    log_p = jax.nn.log_softmax(predf, axis=1)
    p = jax.nn.softmax(predf, axis=1)
    one_hot = jax.nn.one_hot(labels, num_classes, dtype=jnp.float32)
    nce = jnp.sum(one_hot * log_p, axis=1) / jnp.sum(log_p, axis=1)
    mae = 1.0 - jnp.sum(one_hot * p, axis=1)
    return alpha * jnp.mean(nce) + beta * jnp.mean(mae)


if __name__ == "__main__":
    key = jax.random.PRNGKey(0)
    k1, k2 = jax.random.split(key)

    batch = 8
    num_classes = 16
    alpha, beta = 1.0, 1.0

    pred = jax.random.normal(k1, (batch, num_classes), dtype=jnp.float32)
    labels = jax.random.randint(k2, (batch,), 0, num_classes, dtype=jnp.int32)

    loss = nce_and_mae(pred, labels, alpha=alpha, beta=beta)
    loss = jax.block_until_ready(loss)

    ref = _reference(pred, labels, alpha=alpha, beta=beta,
                     num_classes=num_classes)
    assert jnp.allclose(loss, ref, rtol=1e-5, atol=1e-5), (loss, ref)

    print("KERNEL_OK")
</pallas_src>

<mosaic_0001>
module attributes {stable_mosaic.version = 11 : i64} {
  func.func @_nce_mae_kernel(%arg0: i32, %arg1: memref<8x16xf32, #tpu.memory_space<vmem>>, %arg2: memref<8x1xi32, #tpu.memory_space<vmem>>, %arg3: memref<1x8x128xf32, #tpu.memory_space<vmem>>, %arg4: memref<1x8x128xf32, #tpu.memory_space<vmem>>) attributes {dimension_semantics = [#tpu.dimension_semantics<parallel>], iteration_bounds = array<i64: 1>, scalar_prefetch = 0 : i64, scratch_operands = 0 : i64, tpu.core_type = #tpu.core_type<tc>, window_params = [{transform_indices = @transform_0, window_bounds = array<i64: 8, 16>}, {transform_indices = @transform_1, window_bounds = array<i64: 8, 1>}, {transform_indices = @transform_2, window_bounds = array<i64: 1, 8, 128>}, {transform_indices = @transform_3, window_bounds = array<i64: 1, 8, 128>}]} {
    %c0 = arith.constant 0 : index
    %c0_0 = arith.constant 0 : index
    %0 = vector.load %arg1[%c0, %c0_0] : memref<8x16xf32, #tpu.memory_space<vmem>>, vector<8x16xf32>
    %c0_1 = arith.constant 0 : index
    %c0_2 = arith.constant 0 : index
    %1 = vector.load %arg2[%c0_1, %c0_2] : memref<8x1xi32, #tpu.memory_space<vmem>>, vector<8x1xi32>
    %c8_i32 = arith.constant 8 : i32
    %2 = arith.muli %arg0, %c8_i32 : i32
    %3 = tpu.iota {dimensions = array<i32: 0>} : vector<8x1xi32>
    %4 = vector.broadcast %2 : i32 to vector<8x1xi32>
    %5 = arith.addi %4, %3 : vector<8x1xi32>
    %c8_i32_3 = arith.constant 8 : i32
    %6 = vector.broadcast %c8_i32_3 : i32 to vector<8x1xi32>
    %7 = arith.cmpi slt, %5, %6 : vector<8x1xi32>
    %cst = arith.constant 0.000000e+00 : f32
    %8 = vector.shape_cast %7 : vector<8x1xi1> to vector<8x1xi1>
    %9 = vector.broadcast %8 : vector<8x1xi1> to vector<8x16xi1>
    %10 = vector.broadcast %cst : f32 to vector<8x16xf32>
    %11 = arith.select %9, %0, %10 : vector<8x16xi1>, vector<8x16xf32>
    %cst_4 = arith.constant dense<0xFF800000> : vector<8xf32>
    %12 = vector.multi_reduction <maximumf>, %11, %cst_4 [1] : vector<8x16xf32> to vector<8xf32>
    %13 = vector.shape_cast %12 : vector<8xf32> to vector<8x1xf32>
    %14 = vector.broadcast %13 : vector<8x1xf32> to vector<8x16xf32>
    %15 = arith.subf %11, %14 : vector<8x16xf32>
    %16 = math.exp %15 : vector<8x16xf32>
    %cst_5 = arith.constant dense<0.000000e+00> : vector<8xf32>
    %17 = vector.multi_reduction <add>, %16, %cst_5 [1] : vector<8x16xf32> to vector<8xf32>
    %18 = vector.shape_cast %17 : vector<8xf32> to vector<8x1xf32>
    %19 = math.log %18 : vector<8x1xf32>
    %20 = vector.broadcast %19 : vector<8x1xf32> to vector<8x16xf32>
    %21 = arith.subf %15, %20 : vector<8x16xf32>
    %22 = tpu.iota {dimensions = array<i32: 1>} : vector<8x16xi32>
    %23 = vector.broadcast %1 : vector<8x1xi32> to vector<8x16xi32>
    %24 = arith.cmpi eq, %22, %23 : vector<8x16xi32>
    %25 = arith.extui %24 : vector<8x16xi1> to vector<8x16xi32>
    %26 = arith.sitofp %25 : vector<8x16xi32> to vector<8x16xf32>
    %27 = arith.mulf %26, %21 : vector<8x16xf32>
    %cst_6 = arith.constant dense<0.000000e+00> : vector<8xf32>
    %28 = vector.multi_reduction <add>, %27, %cst_6 [1] : vector<8x16xf32> to vector<8xf32>
    %29 = vector.shape_cast %28 : vector<8xf32> to vector<8x1xf32>
    %cst_7 = arith.constant dense<0.000000e+00> : vector<8xf32>
    %30 = vector.multi_reduction <add>, %21, %cst_7 [1] : vector<8x16xf32> to vector<8xf32>
    %31 = vector.shape_cast %30 : vector<8xf32> to vector<8x1xf32>
    %32 = arith.divf %29, %31 : vector<8x1xf32>
    %33 = math.exp %29 : vector<8x1xf32>
    %cst_8 = arith.constant 1.000000e+00 : f32
    %34 = vector.broadcast %cst_8 : f32 to vector<8x1xf32>
    %35 = arith.subf %34, %33 : vector<8x1xf32>
    %36 = arith.extui %7 : vector<8x1xi1> to vector<8x1xi32>
    %37 = arith.sitofp %36 : vector<8x1xi32> to vector<8x1xf32>
    %38 = arith.mulf %32, %37 : vector<8x1xf32>
    %39 = vector.shape_cast %38 : vector<8x1xf32> to vector<1x8x1xf32>
    %cst_9 = arith.constant dense<0.000000e+00> : vector<1xf32>
    %40 = vector.multi_reduction <add>, %39, %cst_9 [1, 2] : vector<1x8x1xf32> to vector<1xf32>
    %41 = vector.shape_cast %40 : vector<1xf32> to vector<1x1x1xf32>
    %42 = vector.extract %41[0, 0, 0] : f32 from vector<1x1x1xf32>
    %43 = arith.mulf %35, %37 : vector<8x1xf32>
    %44 = vector.shape_cast %43 : vector<8x1xf32> to vector<1x8x1xf32>
    %cst_10 = arith.constant dense<0.000000e+00> : vector<1xf32>
    %45 = vector.multi_reduction <add>, %44, %cst_10 [1, 2] : vector<1x8x1xf32> to vector<1xf32>
    %46 = vector.shape_cast %45 : vector<1xf32> to vector<1x1x1xf32>
    %47 = vector.extract %46[0, 0, 0] : f32 from vector<1x1x1xf32>
    %48 = vector.broadcast %42 : f32 to vector<1x8x128xf32>
    %c0_11 = arith.constant 0 : index
    %c0_12 = arith.constant 0 : index
    %c0_13 = arith.constant 0 : index
    %49 = vector.load %arg3[%c0_11, %c0_12, %c0_13] : memref<1x8x128xf32, #tpu.memory_space<vmem>>, vector<1x8x128xf32>
    tpu.vector_store %arg3[%c0_11, %c0_12, %c0_13], %48 {strides = array<i32>} : memref<1x8x128xf32, #tpu.memory_space<vmem>>, vector<1x8x128xf32>,
    %50 = vector.broadcast %47 : f32 to vector<1x8x128xf32>
    %c0_14 = arith.constant 0 : index
    %c0_15 = arith.constant 0 : index
    %c0_16 = arith.constant 0 : index
    %51 = vector.load %arg4[%c0_14, %c0_15, %c0_16] : memref<1x8x128xf32, #tpu.memory_space<vmem>>, vector<1x8x128xf32>
    tpu.vector_store %arg4[%c0_14, %c0_15, %c0_16], %50 {strides = array<i32>} : memref<1x8x128xf32, #tpu.memory_space<vmem>>, vector<1x8x128xf32>,
    return
  }
  func.func @transform_0(%arg0: i32) -> (i32, i32) {
    %c0_i32 = arith.constant 0 : i32
    %c0_i32_0 = arith.constant 0 : i32
    return %arg0, %c0_i32 : i32, i32
  }
  func.func @transform_1(%arg0: i32) -> (i32, i32) {
    %c0_i32 = arith.constant 0 : i32
    %c0_i32_0 = arith.constant 0 : i32
    return %arg0, %c0_i32 : i32, i32
  }
  func.func @transform_2(%arg0: i32) -> (i32, i32, i32) {
    %c0_i32 = arith.constant 0 : i32
    %c0_i32_0 = arith.constant 0 : i32
    %c0_i32_1 = arith.constant 0 : i32
    return %arg0, %c0_i32, %c0_i32_0 : i32, i32, i32
  }
  func.func @transform_3(%arg0: i32) -> (i32, i32, i32) {
    %c0_i32 = arith.constant 0 : i32
    %c0_i32_0 = arith.constant 0 : i32
    %c0_i32_1 = arith.constant 0 : i32
    return %arg0, %c0_i32, %c0_i32_0 : i32, i32, i32
  }
}

</mosaic_0001>

<bundles_post_ra>
// kernel: tpu_custom_call.1
= control target key start
LH: loop header
LB: loop body
LE: loop exit
PB: predicated region body
PF: predicated region fallthrough
CT: control target
= control target key end

     0   :  { %9 = vsyncpa [#allocation3], 0  ;;  %vm26_vm0 = vcmask 130048   ;;  %s218_s0 = inlined_call_operand.vmem [shape: f32[8,16], index: 0, kind: input, shape index: {}]   ;;  %s219_s1 = inlined_call_operand.vmem [shape: s32[8,1], index: 1, kind: input, shape index: {}]   ;;  %s220_s2 = inlined_call_operand.hbm [shape: f32[1,8,128], index: 2, kind: output, shape index: {0}]   ;;  %s221_s3 = inlined_call_operand.hbm [shape: f32[1,8,128], index: 3, kind: output, shape index: {1}]  }
   0x1   :  { %v15_v0 = vld [vmem:[%s218_s0] sm:$0xff] }
   0x2   :  { %10 = vsyncpa [#allocation5], 0  ;;  %v27_v1 = vsel %vm26_vm0, %v15_v0, -inf  ;;  %v16_v2 = vld [vmem:[%s219_s1] sm:$0xff]  ;;  %v178_v3 = vmov 0   ;;  %v39_v10 = vlaneseq  ;;  %v179_v15 = vmov 0.0  }
   0x3   :  { %28 = vmax.xlane.f32.xlu0 %v27_v1  ;;  %124 = vset.pattern.permute.xlu1 %v178_v3  ;;  %vm61_vm2 = vcmask 7168   ;;  %s180_s0 = smov [#allocation2]   ;;  %s181_s17 = smov [#allocation4]  }
   0x4   :  { %125 = vset.pattern.permute.xlu0 %v178_v3  ;;  %42 = vperm.xlu1 %124, %v16_v2   ;;  %v40_v11 = vand.u32 127, %v39_v10  ;;  %s93_s1 = sshll.u32 %s180_s0, 4  ;;  %s103_s18 = sshll.u32 %s181_s17, 4  ;;  %s94_s1 = int_to_ptr.vmem [resolvable:$true] %s93_s1  ;;  %s104_s18 = int_to_ptr.vmem [resolvable:$true] %s103_s18 }
   0x5   :  { %s134_s19 = scalar_lea.vmem %s94_s1, 128  ;;  %p139_p1 = scmp.lt.s32.totalorder %s94_s1, %s94_s1 }
   0x6   :  { %p135_p0 = scmp.ne.s32.totalorder %s94_s1, %s134_s19  ;;  %p140_p2 = scmp.lt.s32.totalorder %s134_s19, %s134_s19 }
   0x8   :  { %p141_p3 = por %p140_p2, %p139_p1 }
   0xa   :  { %p142_p4 = pnand %p141_p3, %p135_p0 }
  0x7f   :  { %v43_v12 = vpop.permute.xlu1 %42 }
  0x80   :  { %vm44_vm1 = vcmp.eq.s32.totalorder %v40_v11, %v43_v12 }
  0x81   :  { %v115_v16 = vsel %vm44_vm1, 1.0, %v179_v15 }
  0x8c   :  { %v29_v4 = vpop.xlane.xlu0 %28 }
  0x8d   :  { %v30_v5 = vsub.f32 %v15_v0, %v29_v4 }
  0x8f   :  { %v31_v6 = vmul.f32 1.442695, %v30_v5 }
  0x91   :  { %126 = vpow2.f32 %v31_v6 }
  0x9e   :  { %v127_v7 = vpop.eup %126 }
  0x9f   :  { %v33_v8 = vsel %vm26_vm0, %v127_v7, 0.0 }
  0xa0   :  { %34 = vadd.xlane.f32.xlu0 %v33_v8 }
 0x129   :  { %v35_v9 = vpop.xlane.xlu0 %34 }
 0x12a   :  { %128 = vlog2.f32 %v35_v9 }
 0x137   :  { %v129_v13 = vpop.eup %128 }
 0x138   :  { %v37_v14 = vmul.f32 0.6931472, %v129_v13 }
 0x13a   :  { %v38_v17 = vsub.f32 %v30_v5, %v37_v14 }
 0x13c   :  { %v51_v18 = vsel %vm26_vm0, %v38_v17, 0.0  ;;  %v47_v19 = vmul.f32 %v115_v16, %v38_v17 }
 0x13d   :  { %52 = vadd.xlane.f32.xlu0 %v51_v18 }
 0x13e   :  { %v48_v20 = vsel %vm26_vm0, %v47_v19, 0.0 }
 0x13f   :  { %49 = vadd.xlane.f32.xlu1 %v48_v20 }
 0x1c6   :  { %v53_v21 = vpop.xlane.xlu0 %52 }
 0x1c7   :  { %130 = vrcp.f32 %v53_v21 }
 0x1c8   :  { %v50_v22 = vpop.xlane.xlu1 %49 }
 0x1c9   :  { %v56_v23 = vmul.f32 1.442695, %v50_v22 }
 0x1cb   :  { %132 = vpow2.f32 %v56_v23 }
 0x1d4   :  { %v131_v24 = vpop.eup %130 }
 0x1d5   :  { %v55_v25 = vmul.f32 %v131_v24, %v50_v22 }
 0x1d7   :  { %v62_v26 = vsel %vm61_vm2, %v55_v25, 0.0 }
 0x1d8   :  { %v133_v27 = vpop.eup %132  ;;  %63 = vadd.xlane.f32.xlu0 %v62_v26 }
 0x1d9   :  { %v58_v28 = vsub.f32 1.0, %v133_v27 }
 0x1db   :  { %v73_v29 = vsel %vm61_vm2, %v58_v28, 0.0 }
 0x1dc   :  { %74 = vadd.xlane.f32.xlu0 %v73_v29 }
 0x261   :  { %v64_v30 = vpop.xlane.xlu0 %63 }
 0x262   :  { %v65_v31 = vrot.slane %v64_v30, 4 }
 0x264   :  { %v66_v32 = vadd.f32 %v65_v31, %v64_v30 }
 0x265   :  { %v75_v33 = vpop.xlane.xlu0 %74 }
 0x266   :  { %v67_v34 = vrot.slane %v66_v32, 2  ;;  %v76_v35 = vrot.slane %v75_v33, 4 }
 0x268   :  { %v77_v36 = vadd.f32 %v76_v35, %v75_v33  ;;  %v68_v37 = vadd.f32 %v67_v34, %v66_v32 }
 0x26a   :  { %v78_v38 = vrot.slane %v77_v36, 2  ;;  %v69_v39 = vrot.slane %v68_v37, 1 }
 0x26c   :  { %v79_v40 = vadd.f32 %v78_v38, %v77_v36  ;;  %v70_v41 = vadd.f32 %v69_v39, %v68_v37 }
 0x26e   :  { %116 = vpush %v70_v41  ;;  %v80_v42 = vrot.slane %v79_v40, 1 }
 0x270   :  { %v81_v43 = vadd.f32 %v80_v42, %v79_v40 }
 0x272   :  { %118 = vpush %v81_v43 }
 0x29f   :  { %s117_s16 = spop %116 }
 0x2a0   :  { %v83_v44 = vstv %s117_s16 }
 0x2a1   :  { %84 = vst [vmem:[#allocation2] sm:$0xff] %v83_v44 }
 0x2a2   :  { %145 = shalt.err (!%p142_p4)
}
 0x2a3   :  { %96 = dma.vmem_to_hbm [thread:$0]  %s94_s1, 128, %s220_s2, [#allocation3]  }
 0x2a4   :  { %s119_s22 = spop %118  ;;  %s154_s23 = scalar_lea.vmem %s104_s18, 128 }
 0x2a5   :  { %v85_v45 = vstv %s119_s22  ;;  %p155_p5 = scmp.ne.s32.totalorder %s104_s18, %s154_s23  ;;  %p159_p6 = scmp.lt.s32.totalorder %s104_s18, %s104_s18 }
 0x2a6   :  { %86 = vst [vmem:[#allocation4] sm:$0xff] %v85_v45  ;;  %p160_p7 = scmp.lt.s32.totalorder %s154_s23, %s154_s23 }
 0x2a8   :  { %p161_p8 = por %p160_p7, %p159_p6 }
 0x2aa   :  { %p162_p9 = pnand %p161_p8, %p155_p5 }
 0x2ac   :  { %165 = shalt.err (!%p162_p9)
}
 0x2ad   :  { %106 = dma.vmem_to_hbm [thread:$0]  %s104_s18, 128, %s221_s3, [#allocation5]  }
 0x2ae   :  { %174 = dma.done.wait [#allocation3], 128  }
 0x2af   :  { %175 = vsyncadd [#allocation3], 4294967168 }
 0x2b0   :  { %176 = dma.done.wait [#allocation5], 128  }
 0x2b1   :  { %177 = vsyncadd [#allocation5], 4294967168 }
 0x2b2   :  { %113 = vsyncpa [#allocation3], 1 }
 0x2b3   :  { %114 = vsyncpa [#allocation5], 1 }

</bundles_post_ra>
